<compile_context>
chip_gen: v6e
topology: v6e:2x2x1
jax: 0.10.0
libtpu: 0.0.40
codegen_flags: <defaults>
</compile_context>

<pallas_src>
import jax
import jax.numpy as jnp
from jax.experimental import pallas as pl
from jax.experimental.pallas import tpu as pltpu


# ---------------------------------------------------------------------------
# helpers
# ---------------------------------------------------------------------------

def _vmem_capacity_bytes():
    """Per-core VMEM capacity (128 MiB v5e/v6e, 64 MiB v7x)."""
    try:
        return int(pltpu.get_tpu_info().vmem_capacity_bytes)
    except Exception:
        return 64 * 1024 * 1024  # conservative (v7x)


def _lane_pack_factor(C, HW):
    """Pack k spatial positions so the last dim (k*C) is a multiple of 128."""
    if C % 128 == 0:
        return 1
    k = 2
    while k <= 128:
        if (k * C) % 128 == 0 and HW % k == 0:
            return k
        k += 1
    return 1


def _pick_row_tile(total_rows, row_bytes, target_bytes=2 << 20):
    """Largest multiple-of-8 divisor of total_rows with <= target_bytes/row_bytes rows."""
    target = max(8, target_bytes // max(row_bytes, 1))
    if total_rows <= target:
        return total_rows
    best = None
    for d in range(8, int(target) + 1, 8):
        if total_rows % d == 0:
            best = d
    return best if best is not None else total_rows


# ---------------------------------------------------------------------------
# kernels
# ---------------------------------------------------------------------------

def _make_onepass_kernel(k, C, inv_hw):
    """One batch element fully resident: mean (MXU) + MLP + native-dtype scale."""

    def kernel(x_ref, w1_ref, b1_ref, w2_ref, b2_ref, o_ref):
        x = x_ref[0]                                             # (HW_k, k*C), native dtype
        # Spatial sum on the MXU (ones-vector matmul), f32 accumulation.
        ones = jnp.full((1, x.shape[0]), 1.0, dtype=x.dtype)
        s = jnp.dot(ones, x, preferred_element_type=jnp.float32)  # (1, k*C) f32
        # Fold the k packed spatial groups back onto C channels.
        if k > 1:
            tot = s[:, 0:C]
            for i in range(1, k):
                tot = tot + s[:, i * C:(i + 1) * C]
        else:
            tot = s
        mean = tot * inv_hw                                      # (1, C) f32
        # Excitation MLP (tiny; latency noise).
        h = jnp.dot(mean, w1_ref[...], preferred_element_type=jnp.float32) + b1_ref[...]
        h = jnp.maximum(h, 0.0)
        g = jnp.dot(h, w2_ref[...], preferred_element_type=jnp.float32) + b2_ref[...]
        g = jax.nn.sigmoid(g)                                    # (1, C) f32
        if k > 1:
            g = jnp.concatenate([g] * k, axis=-1)                # (1, k*C)
        # Scale in the native dtype; gate is cast exactly once.
        o_ref[0] = x * g.astype(o_ref.dtype)

    return kernel


def _make_gate_kernel(k, C, inv_hw):
    """Two-pass plan, pass 1: partial spatial sums (MXU) -> gate per (batch, channel)."""

    def kernel(x_ref, w1_ref, b1_ref, w2_ref, b2_ref, g_ref, acc_ref):
        t = pl.program_id(1)

        @pl.when(t == 0)
        def _():
            acc_ref[...] = jnp.zeros_like(acc_ref)

        x = x_ref[0]                                             # (thw, k*C)
        ones = jnp.full((1, x.shape[0]), 1.0, dtype=x.dtype)
        acc_ref[...] += jnp.dot(ones, x, preferred_element_type=jnp.float32)

        @pl.when(t == pl.num_programs(1) - 1)
        def _():
            s = acc_ref[...]
            if k > 1:
                tot = s[:, 0:C]
                for i in range(1, k):
                    tot = tot + s[:, i * C:(i + 1) * C]
            else:
                tot = s
            mean = tot * inv_hw
            h = jnp.maximum(
                jnp.dot(mean, w1_ref[...], preferred_element_type=jnp.float32) + b1_ref[...],
                0.0)
            g = jax.nn.sigmoid(
                jnp.dot(h, w2_ref[...], preferred_element_type=jnp.float32) + b2_ref[...])
            if k > 1:
                g = jnp.concatenate([g] * k, axis=-1)
            g_ref[0] = g.astype(g_ref.dtype)

    return kernel


def _scale_kernel(x_ref, g_ref, o_ref):
    """Two-pass plan, pass 2: native-dtype elementwise scale."""
    o_ref[0] = x_ref[0] * g_ref[0]


# ---------------------------------------------------------------------------
# pallas_call builders
# ---------------------------------------------------------------------------

def _weight_spec(shape, n_grid_axes, single_buffer):
    index_map = (lambda b: (0,) * len(shape)) if n_grid_axes == 1 else \
                (lambda b, t: (0,) * len(shape))
    if single_buffer:
        # Weights never change block index -> single buffer, loaded once.
        return pl.BlockSpec(shape, index_map, pipeline_mode=pl.Buffered(1))
    return pl.BlockSpec(shape, index_map)


def _param_bytes(*arrays):
    return sum(int(a.size) * jnp.dtype(a.dtype).itemsize for a in arrays)


def _onepass_call(x3, w1, b1_2d, w2, b2_2d, *, k, C, hidden, HW, cap,
                  single_buffer_weights):
    B, HW_k, kC = x3.shape
    itemsize = jnp.dtype(x3.dtype).itemsize
    block_bytes = HW_k * kC * itemsize
    w_bytes = _param_bytes(w1, b1_2d, w2, b2_2d)
    vmem_limit = int(min(cap, max(32 << 20, 6 * block_bytes + 4 * w_bytes + (2 << 20))))

    cost = pl.CostEstimate(
        flops=int(3 * B * HW * C + 4 * B * C * hidden),
        transcendentals=int(B * C),
        bytes_accessed=int(2 * B * HW * C * itemsize + w_bytes),
    )

    return pl.pallas_call(
        _make_onepass_kernel(k, C, 1.0 / HW),
        out_shape=jax.ShapeDtypeStruct((B, HW_k, kC), x3.dtype),
        grid_spec=pltpu.PrefetchScalarGridSpec(
            num_scalar_prefetch=0,
            grid=(B,),
            in_specs=[
                pl.BlockSpec((1, HW_k, kC), lambda b: (b, 0, 0)),
                _weight_spec((C, hidden), 1, single_buffer_weights),
                _weight_spec((1, hidden), 1, single_buffer_weights),
                _weight_spec((hidden, C), 1, single_buffer_weights),
                _weight_spec((1, C), 1, single_buffer_weights),
            ],
            out_specs=pl.BlockSpec((1, HW_k, kC), lambda b: (b, 0, 0)),
        ),
        compiler_params=pltpu.CompilerParams(
            dimension_semantics=("parallel",),
            vmem_limit_bytes=vmem_limit,
        ),
        cost_estimate=cost,
    )(x3, w1, b1_2d, w2, b2_2d)


def _twopass_call(x3, w1, b1_2d, w2, b2_2d, *, k, C, hidden, HW, cap,
                  row_block, single_buffer_weights):
    B, HW_k, kC = x3.shape
    itemsize = jnp.dtype(x3.dtype).itemsize
    row_bytes = kC * itemsize

    if (row_block is not None and HW_k % row_block == 0
            and (row_block % 8 == 0 or row_block == HW_k)):
        thw = row_block
    else:
        thw = _pick_row_tile(HW_k, row_bytes)
    nt = HW_k // thw

    block_bytes = thw * kC * itemsize
    w_bytes = _param_bytes(w1, b1_2d, w2, b2_2d)
    vmem_limit = int(min(cap, max(32 << 20, 6 * block_bytes + 4 * w_bytes + (2 << 20))))

    # Pass 1: pooled mean + MLP -> gate (already tiled to k*C lanes).
    gate = pl.pallas_call(
        _make_gate_kernel(k, C, 1.0 / HW),
        out_shape=jax.ShapeDtypeStruct((B, 1, kC), x3.dtype),
        grid_spec=pltpu.PrefetchScalarGridSpec(
            num_scalar_prefetch=0,
            grid=(B, nt),
            in_specs=[
                pl.BlockSpec((1, thw, kC), lambda b, t: (b, t, 0)),
                _weight_spec((C, hidden), 2, single_buffer_weights),
                _weight_spec((1, hidden), 2, single_buffer_weights),
                _weight_spec((hidden, C), 2, single_buffer_weights),
                _weight_spec((1, C), 2, single_buffer_weights),
            ],
            out_specs=pl.BlockSpec((1, 1, kC), lambda b, t: (b, 0, 0)),
            scratch_shapes=[pltpu.VMEM((1, kC), jnp.float32)],
        ),
        compiler_params=pltpu.CompilerParams(
            dimension_semantics=("parallel", "arbitrary"),
            vmem_limit_bytes=vmem_limit,
        ),
        cost_estimate=pl.CostEstimate(
            flops=int(2 * B * HW * C + 4 * B * C * hidden),
            transcendentals=int(B * C),
            bytes_accessed=int(B * HW * C * itemsize + w_bytes + B * kC * itemsize),
        ),
    )(x3, w1, b1_2d, w2, b2_2d)

    # Pass 2: elementwise scale, fully parallel over (batch, spatial tiles).
    return pl.pallas_call(
        _scale_kernel,
        out_shape=jax.ShapeDtypeStruct((B, HW_k, kC), x3.dtype),
        grid_spec=pltpu.PrefetchScalarGridSpec(
            num_scalar_prefetch=0,
            grid=(B, nt),
            in_specs=[
                pl.BlockSpec((1, thw, kC), lambda b, t: (b, t, 0)),
                pl.BlockSpec((1, 1, kC), lambda b, t: (b, 0, 0)),
            ],
            out_specs=pl.BlockSpec((1, thw, kC), lambda b, t: (b, t, 0)),
        ),
        compiler_params=pltpu.CompilerParams(
            dimension_semantics=("parallel", "parallel"),
            vmem_limit_bytes=vmem_limit,
        ),
        cost_estimate=pl.CostEstimate(
            flops=int(B * HW * C),
            transcendentals=0,
            bytes_accessed=int(2 * B * HW * C * itemsize + B * kC * itemsize),
        ),
    )(x3, gate)


# ---------------------------------------------------------------------------
# public wrapper
# ---------------------------------------------------------------------------

def squeeze_excitation(x, w1, b1, w2, b2, *, force_two_pass=False, row_block=None):
    """x: (B, H, W, C) NHWC.  Returns same shape/dtype."""
    B, H, W, C = x.shape
    HW = H * W
    hidden = w1.shape[1]
    itemsize = jnp.dtype(x.dtype).itemsize

    # Lane-dense packing: last dim becomes a multiple of 128 when possible.
    k = _lane_pack_factor(C, HW)
    kC = k * C
    HW_k = HW // k
    x3 = x.reshape(B, HW_k, kC)          # contiguous -> free reshape
    b1_2d = b1.reshape(1, hidden)
    b2_2d = b2.reshape(1, C)

    cap = _vmem_capacity_bytes()
    onepass_block = HW_k * kC * itemsize
    onepass_need = 6 * onepass_block + 4 * _param_bytes(w1, b1_2d, w2, b2_2d) + (2 << 20)
    # Two-pass when the resident plan is too big for VMEM, or when B is too
    # small to give both v7x TensorCores / the pipeline any parallel work.
    use_two_pass = force_two_pass or (onepass_need > int(0.6 * cap)) or (B == 1)

    def _call(single_buffer_weights):
        if use_two_pass:
            return _twopass_call(x3, w1, b1_2d, w2, b2_2d, k=k, C=C, hidden=hidden,
                                 HW=HW, cap=cap, row_block=row_block,
                                 single_buffer_weights=single_buffer_weights)
        return _onepass_call(x3, w1, b1_2d, w2, b2_2d, k=k, C=C, hidden=hidden,
                             HW=HW, cap=cap,
                             single_buffer_weights=single_buffer_weights)

    try:
        out3 = _call(True)
    except Exception:
        # pipeline_mode=pl.Buffered(1) unsupported on this JAX build:
        # fall back to default double-buffered weight specs.
        out3 = _call(False)

    return out3.reshape(B, H, W, C)


def reference_se(x, w1, b1, w2, b2):
    """Pure-JAX reference for correctness checking."""
    xf = x.astype(jnp.float32)
    mean = jnp.mean(xf, axis=(1, 2))                      # (B, C)
    h = jnp.maximum(mean @ w1 + b1, 0.0)
    g = jax.nn.sigmoid(h @ w2 + b2)                       # (B, C)
    return (xf * g[:, None, None, :]).astype(x.dtype)


if __name__ == "__main__":
    # Small deterministic config: d_model=64, ratio=16 -> hidden=4
    B, H, W, C = 2, 16, 16, 64
    ratio = 16
    hidden = C // ratio

    key = jax.random.PRNGKey(0)
    kx, k1, k2, k3, k4 = jax.random.split(key, 5)

    x = jax.random.normal(kx, (B, H, W, C), dtype=jnp.float32)
    w1 = jax.random.normal(k1, (C, hidden), dtype=jnp.float32) * 0.1
    b1 = jax.random.normal(k2, (hidden,), dtype=jnp.float32) * 0.1
    w2 = jax.random.normal(k3, (hidden, C), dtype=jnp.float32) * 0.1
    b2 = jax.random.normal(k4, (C,), dtype=jnp.float32) * 0.1

    ref = reference_se(x, w1, b1, w2, b2)

    # Primary one-pass path (x read from HBM once, written once).
    out = jax.block_until_ready(squeeze_excitation(x, w1, b1, w2, b2))
    assert out.shape == x.shape and out.dtype == x.dtype
    # Tolerance allows for MXU-mean accumulation order / default TPU matmul
    # precision differing from the plain-JAX reference reduction.
    assert jnp.allclose(out, ref, atol=2e-4, rtol=2e-4), "one-pass mismatch vs reference"

    # Two-pass (gate + scale) path used for VMEM-constrained / batch-1 cases.
    out2 = jax.block_until_ready(
        squeeze_excitation(x, w1, b1, w2, b2, force_two_pass=True, row_block=32))
    assert out2.shape == x.shape and out2.dtype == x.dtype
    assert jnp.allclose(out2, ref, atol=2e-4, rtol=2e-4), "two-pass mismatch vs reference"

    print("KERNEL_OK")
</pallas_src>

<mosaic_0001>
module attributes {stable_mosaic.version = 11 : i64} {
  func.func @kernel(%arg0: i32, %arg1: memref<1x128x128xf32, #tpu.memory_space<vmem>>, %arg2: memref<64x4xf32, #tpu.memory_space<vmem>>, %arg3: memref<1x4xf32, #tpu.memory_space<vmem>>, %arg4: memref<4x64xf32, #tpu.memory_space<vmem>>, %arg5: memref<1x64xf32, #tpu.memory_space<vmem>>, %arg6: memref<1x128x128xf32, #tpu.memory_space<vmem>>) attributes {dimension_semantics = [#tpu.dimension_semantics<parallel>], iteration_bounds = array<i64: 2>, scalar_prefetch = 0 : i64, scratch_operands = 0 : i64, tpu.core_type = #tpu.core_type<tc>, window_params = [{transform_indices = @transform_0, window_bounds = array<i64: 1, 128, 128>}, {pipeline_mode = #tpu.pipeline_mode<synchronous>, transform_indices = @transform_1, window_bounds = array<i64: 64, 4>}, {pipeline_mode = #tpu.pipeline_mode<synchronous>, transform_indices = @transform_2, window_bounds = array<i64: 1, 4>}, {pipeline_mode = #tpu.pipeline_mode<synchronous>, transform_indices = @transform_3, window_bounds = array<i64: 4, 64>}, {pipeline_mode = #tpu.pipeline_mode<synchronous>, transform_indices = @transform_4, window_bounds = array<i64: 1, 64>}, {transform_indices = @transform_5, window_bounds = array<i64: 1, 128, 128>}]} {
    %c0 = arith.constant 0 : index
    %c0_0 = arith.constant 0 : index
    %c0_1 = arith.constant 0 : index
    %0 = vector.load %arg1[%c0, %c0_0, %c0_1] : memref<1x128x128xf32, #tpu.memory_space<vmem>>, vector<1x128x128xf32>
    %1 = vector.shape_cast %0 : vector<1x128x128xf32> to vector<128x128xf32>
    %cst = arith.constant 1.000000e+00 : f32
    %2 = vector.broadcast %cst : f32 to vector<1x128xf32>
    %cst_2 = arith.constant dense<0.000000e+00> : vector<1x128xf32>
    %3 = tpu.matmul %2, %1, %cst_2 {dimension_numbers = #tpu.dot_dimension_numbers<[1], [0], [0], [1], [0, 0, 1, 1], [], []>} : vector<1x128xf32>, vector<128x128xf32>, vector<1x128xf32> -> vector<1x128xf32>
    %4 = vector.extract_strided_slice %3 {offsets = [0, 0], sizes = [1, 64], strides = [1, 1]} : vector<1x128xf32> to vector<1x64xf32>
    %5 = vector.extract_strided_slice %3 {offsets = [0, 64], sizes = [1, 64], strides = [1, 1]} : vector<1x128xf32> to vector<1x64xf32>
    %6 = arith.addf %4, %5 : vector<1x64xf32>
    %cst_3 = arith.constant 3.906250e-03 : f32
    %7 = vector.broadcast %cst_3 : f32 to vector<1x64xf32>
    %8 = arith.mulf %6, %7 : vector<1x64xf32>
    %c0_4 = arith.constant 0 : index
    %c0_5 = arith.constant 0 : index
    %9 = vector.load %arg2[%c0_4, %c0_5] : memref<64x4xf32, #tpu.memory_space<vmem>>, vector<64x4xf32>
    %cst_6 = arith.constant dense<0.000000e+00> : vector<1x4xf32>
    %10 = tpu.matmul %8, %9, %cst_6 {dimension_numbers = #tpu.dot_dimension_numbers<[1], [0], [0], [1], [0, 0, 1, 1], [], []>} : vector<1x64xf32>, vector<64x4xf32>, vector<1x4xf32> -> vector<1x4xf32>
    %c0_7 = arith.constant 0 : index
    %c0_8 = arith.constant 0 : index
    %11 = vector.load %arg3[%c0_7, %c0_8] : memref<1x4xf32, #tpu.memory_space<vmem>>, vector<1x4xf32>
    %12 = arith.addf %10, %11 : vector<1x4xf32>
    %cst_9 = arith.constant 0.000000e+00 : f32
    %13 = vector.broadcast %cst_9 : f32 to vector<1x4xf32>
    %14 = arith.maximumf %12, %13 : vector<1x4xf32>
    %c0_10 = arith.constant 0 : index
    %c0_11 = arith.constant 0 : index
    %15 = vector.load %arg4[%c0_10, %c0_11] : memref<4x64xf32, #tpu.memory_space<vmem>>, vector<4x64xf32>
    %cst_12 = arith.constant dense<0.000000e+00> : vector<1x64xf32>
    %16 = tpu.matmul %14, %15, %cst_12 {dimension_numbers = #tpu.dot_dimension_numbers<[1], [0], [0], [1], [0, 0, 1, 1], [], []>} : vector<1x4xf32>, vector<4x64xf32>, vector<1x64xf32> -> vector<1x64xf32>
    %c0_13 = arith.constant 0 : index
    %c0_14 = arith.constant 0 : index
    %17 = vector.load %arg5[%c0_13, %c0_14] : memref<1x64xf32, #tpu.memory_space<vmem>>, vector<1x64xf32>
    %18 = arith.addf %16, %17 : vector<1x64xf32>
    %19 = arith.negf %18 : vector<1x64xf32>
    %20 = math.exp %19 : vector<1x64xf32>
    %cst_15 = arith.constant 1.000000e+00 : f32
    %21 = vector.broadcast %cst_15 : f32 to vector<1x64xf32>
    %22 = arith.addf %21, %20 : vector<1x64xf32>
    %23 = arith.divf %21, %22 : vector<1x64xf32>
    %24 = tpu.concatenate %23, %23 in 1 : vector<1x64xf32>, vector<1x64xf32> -> vector<1x128xf32>
    %25 = vector.broadcast %24 : vector<1x128xf32> to vector<128x128xf32>
    %26 = arith.mulf %1, %25 : vector<128x128xf32>
    %c0_16 = arith.constant 0 : index
    %c0_17 = arith.constant 0 : index
    %c0_18 = arith.constant 0 : index
    %27 = vector.load %arg6[%c0_16, %c0_17, %c0_18] : memref<1x128x128xf32, #tpu.memory_space<vmem>>, vector<1x128x128xf32>
    %28 = vector.shape_cast %27 : vector<1x128x128xf32> to vector<128x128xf32>
    %29 = vector.shape_cast %26 : vector<128x128xf32> to vector<1x128x128xf32>
    tpu.vector_store %arg6[%c0_16, %c0_17, %c0_18], %29 {strides = array<i32>} : memref<1x128x128xf32, #tpu.memory_space<vmem>>, vector<1x128x128xf32>,
    return
  }
  func.func @transform_0(%arg0: i32) -> (i32, i32, i32) {
    %c0_i32 = arith.constant 0 : i32
    %c0_i32_0 = arith.constant 0 : i32
    %c0_i32_1 = arith.constant 0 : i32
    return %arg0, %c0_i32, %c0_i32_0 : i32, i32, i32
  }
  func.func @transform_1(%arg0: i32) -> (i32, i32) {
    %c0_i32 = arith.constant 0 : i32
    %c0_i32_0 = arith.constant 0 : i32
    %c0_i32_1 = arith.constant 0 : i32
    return %c0_i32, %c0_i32_0 : i32, i32
  }
  func.func @transform_2(%arg0: i32) -> (i32, i32) {
    %c0_i32 = arith.constant 0 : i32
    %c0_i32_0 = arith.constant 0 : i32
    %c0_i32_1 = arith.constant 0 : i32
    return %c0_i32, %c0_i32_0 : i32, i32
  }
  func.func @transform_3(%arg0: i32) -> (i32, i32) {
    %c0_i32 = arith.constant 0 : i32
    %c0_i32_0 = arith.constant 0 : i32
    %c0_i32_1 = arith.constant 0 : i32
    return %c0_i32, %c0_i32_0 : i32, i32
  }
  func.func @transform_4(%arg0: i32) -> (i32, i32) {
    %c0_i32 = arith.constant 0 : i32
    %c0_i32_0 = arith.constant 0 : i32
    %c0_i32_1 = arith.constant 0 : i32
    return %c0_i32, %c0_i32_0 : i32, i32
  }
  func.func @transform_5(%arg0: i32) -> (i32, i32, i32) {
    %c0_i32 = arith.constant 0 : i32
    %c0_i32_0 = arith.constant 0 : i32
    %c0_i32_1 = arith.constant 0 : i32
    return %arg0, %c0_i32, %c0_i32_0 : i32, i32, i32
  }
}

module attributes {stable_mosaic.version = 11 : i64} {
  func.func @kernel(%arg0: i32, %arg1: memref<1x128x128xf32, #tpu.memory_space<vmem>>, %arg2: memref<64x4xf32, #tpu.memory_space<vmem>>, %arg3: memref<1x4xf32, #tpu.memory_space<vmem>>, %arg4: memref<4x64xf32, #tpu.memory_space<vmem>>, %arg5: memref<1x64xf32, #tpu.memory_space<vmem>>, %arg6: memref<1x128x128xf32, #tpu.memory_space<vmem>>) attributes {dimension_semantics = [#tpu.dimension_semantics<parallel>], iteration_bounds = array<i64: 2>, scalar_prefetch = 0 : i64, scratch_operands = 0 : i64, tpu.core_type = #tpu.core_type<tc>, window_params = [{transform_indices = @transform_0, window_bounds = array<i64: 1, 128, 128>}, {pipeline_mode = #tpu.pipeline_mode<synchronous>, transform_indices = @transform_1, window_bounds = array<i64: 64, 4>}, {pipeline_mode = #tpu.pipeline_mode<synchronous>, transform_indices = @transform_2, window_bounds = array<i64: 1, 4>}, {pipeline_mode = #tpu.pipeline_mode<synchronous>, transform_indices = @transform_3, window_bounds = array<i64: 4, 64>}, {pipeline_mode = #tpu.pipeline_mode<synchronous>, transform_indices = @transform_4, window_bounds = array<i64: 1, 64>}, {transform_indices = @transform_5, window_bounds = array<i64: 1, 128, 128>}]} {
    %c0 = arith.constant 0 : index
    %c0_0 = arith.constant 0 : index
    %c0_1 = arith.constant 0 : index
    %0 = vector.load %arg1[%c0, %c0_0, %c0_1] : memref<1x128x128xf32, #tpu.memory_space<vmem>>, vector<1x128x128xf32>
    %1 = vector.shape_cast %0 : vector<1x128x128xf32> to vector<128x128xf32>
    %cst = arith.constant 1.000000e+00 : f32
    %2 = vector.broadcast %cst : f32 to vector<1x128xf32>
    %cst_2 = arith.constant dense<0.000000e+00> : vector<1x128xf32>
    %3 = tpu.matmul %2, %1, %cst_2 {dimension_numbers = #tpu.dot_dimension_numbers<[1], [0], [0], [1], [0, 0, 1, 1], [], []>} : vector<1x128xf32>, vector<128x128xf32>, vector<1x128xf32> -> vector<1x128xf32>
    %4 = vector.extract_strided_slice %3 {offsets = [0, 0], sizes = [1, 64], strides = [1, 1]} : vector<1x128xf32> to vector<1x64xf32>
    %5 = vector.extract_strided_slice %3 {offsets = [0, 64], sizes = [1, 64], strides = [1, 1]} : vector<1x128xf32> to vector<1x64xf32>
    %6 = arith.addf %4, %5 : vector<1x64xf32>
    %cst_3 = arith.constant 3.906250e-03 : f32
    %7 = vector.broadcast %cst_3 : f32 to vector<1x64xf32>
    %8 = arith.mulf %6, %7 : vector<1x64xf32>
    %c0_4 = arith.constant 0 : index
    %c0_5 = arith.constant 0 : index
    %9 = vector.load %arg2[%c0_4, %c0_5] : memref<64x4xf32, #tpu.memory_space<vmem>>, vector<64x4xf32>
    %cst_6 = arith.constant dense<0.000000e+00> : vector<1x4xf32>
    %10 = tpu.matmul %8, %9, %cst_6 {dimension_numbers = #tpu.dot_dimension_numbers<[1], [0], [0], [1], [0, 0, 1, 1], [], []>} : vector<1x64xf32>, vector<64x4xf32>, vector<1x4xf32> -> vector<1x4xf32>
    %c0_7 = arith.constant 0 : index
    %c0_8 = arith.constant 0 : index
    %11 = vector.load %arg3[%c0_7, %c0_8] : memref<1x4xf32, #tpu.memory_space<vmem>>, vector<1x4xf32>
    %12 = arith.addf %10, %11 : vector<1x4xf32>
    %cst_9 = arith.constant 0.000000e+00 : f32
    %13 = vector.broadcast %cst_9 : f32 to vector<1x4xf32>
    %14 = arith.maximumf %12, %13 : vector<1x4xf32>
    %c0_10 = arith.constant 0 : index
    %c0_11 = arith.constant 0 : index
    %15 = vector.load %arg4[%c0_10, %c0_11] : memref<4x64xf32, #tpu.memory_space<vmem>>, vector<4x64xf32>
    %cst_12 = arith.constant dense<0.000000e+00> : vector<1x64xf32>
    %16 = tpu.matmul %14, %15, %cst_12 {dimension_numbers = #tpu.dot_dimension_numbers<[1], [0], [0], [1], [0, 0, 1, 1], [], []>} : vector<1x4xf32>, vector<4x64xf32>, vector<1x64xf32> -> vector<1x64xf32>
    %c0_13 = arith.constant 0 : index
    %c0_14 = arith.constant 0 : index
    %17 = vector.load %arg5[%c0_13, %c0_14] : memref<1x64xf32, #tpu.memory_space<vmem>>, vector<1x64xf32>
    %18 = arith.addf %16, %17 : vector<1x64xf32>
    %19 = arith.negf %18 : vector<1x64xf32>
    %20 = math.exp %19 : vector<1x64xf32>
    %cst_15 = arith.constant 1.000000e+00 : f32
    %21 = vector.broadcast %cst_15 : f32 to vector<1x64xf32>
    %22 = arith.addf %21, %20 : vector<1x64xf32>
    %23 = arith.divf %21, %22 : vector<1x64xf32>
    %24 = tpu.concatenate %23, %23 in 1 : vector<1x64xf32>, vector<1x64xf32> -> vector<1x128xf32>
    %25 = vector.broadcast %24 : vector<1x128xf32> to vector<128x128xf32>
    %26 = arith.mulf %1, %25 : vector<128x128xf32>
    %c0_16 = arith.constant 0 : index
    %c0_17 = arith.constant 0 : index
    %c0_18 = arith.constant 0 : index
    %27 = vector.load %arg6[%c0_16, %c0_17, %c0_18] : memref<1x128x128xf32, #tpu.memory_space<vmem>>, vector<1x128x128xf32>
    %28 = vector.shape_cast %27 : vector<1x128x128xf32> to vector<128x128xf32>
    %29 = vector.shape_cast %26 : vector<128x128xf32> to vector<1x128x128xf32>
    tpu.vector_store %arg6[%c0_16, %c0_17, %c0_18], %29 {strides = array<i32>} : memref<1x128x128xf32, #tpu.memory_space<vmem>>, vector<1x128x128xf32>,
    return
  }
  func.func @transform_0(%arg0: i32) -> (i32, i32, i32) {
    %c0_i32 = arith.constant 0 : i32
    %c0_i32_0 = arith.constant 0 : i32
    %c0_i32_1 = arith.constant 0 : i32
    return %arg0, %c0_i32, %c0_i32_0 : i32, i32, i32
  }
  func.func @transform_1(%arg0: i32) -> (i32, i32) {
    %c0_i32 = arith.constant 0 : i32
    %c0_i32_0 = arith.constant 0 : i32
    %c0_i32_1 = arith.constant 0 : i32
    return %c0_i32, %c0_i32_0 : i32, i32
  }
  func.func @transform_2(%arg0: i32) -> (i32, i32) {
    %c0_i32 = arith.constant 0 : i32
    %c0_i32_0 = arith.constant 0 : i32
    %c0_i32_1 = arith.constant 0 : i32
    return %c0_i32, %c0_i32_0 : i32, i32
  }
  func.func @transform_3(%arg0: i32) -> (i32, i32) {
    %c0_i32 = arith.constant 0 : i32
    %c0_i32_0 = arith.constant 0 : i32
    %c0_i32_1 = arith.constant 0 : i32
    return %c0_i32, %c0_i32_0 : i32, i32
  }
  func.func @transform_4(%arg0: i32) -> (i32, i32) {
    %c0_i32 = arith.constant 0 : i32
    %c0_i32_0 = arith.constant 0 : i32
    %c0_i32_1 = arith.constant 0 : i32
    return %c0_i32, %c0_i32_0 : i32, i32
  }
  func.func @transform_5(%arg0: i32) -> (i32, i32, i32) {
    %c0_i32 = arith.constant 0 : i32
    %c0_i32_0 = arith.constant 0 : i32
    %c0_i32_1 = arith.constant 0 : i32
    return %arg0, %c0_i32, %c0_i32_0 : i32, i32, i32
  }
}

</mosaic_0001>

<bundles_post_ra>
// kernel: tpu_custom_call.1
= control target key start
LH: loop header
LB: loop body
LE: loop exit
PB: predicated region body
PF: predicated region fallthrough
CT: control target
= control target key end

     0   :  { %10 = vsyncpa [#allocation3], 0  ;;  %s1257_s0 = inlined_call_operand.hbm [shape: f32[2,128,128], index: 0, kind: input, shape index: {}]   ;;  %s1258_s1 = inlined_call_operand.vmem [shape: f32[64,4], index: 1, kind: input, shape index: {}]   ;;  %s1259_s2 = inlined_call_operand.vmem [shape: f32[1,4], index: 2, kind: input, shape index: {}]   ;;  %s1260_s3 = inlined_call_operand.vmem [shape: f32[4,64], index: 3, kind: input, shape index: {}]   ;;  %s1261_s4 = inlined_call_operand.vmem [shape: f32[1,64], index: 4, kind: input, shape index: {}]   ;;  %s1262_s5 = inlined_call_operand.hbm [shape: f32[2,128,128], index: 5, kind: output, shape index: {}]  }
   0x1   :  { %12 = vsyncpa [#allocation3 + $0x1], 0 }
   0x2   :  { %13 = vsyncpa [#allocation4], 0 }
   0x3   :  { %15 = vsyncpa [#allocation4 + $0x1], 0  ;;  %s932_s18 = smov 0   ;;  %s934_s19 = smov 0  }
   0x4   :  { %s936_s20 = smov 0   ;;  %s938_s21 = smov 0  }
   0x5 LB: > { %s953_s22 = sadd.s32 4294967295, %s890_s21   ;;  %s633_s23 = sadd.s32 4294967294, %s890_s21   ;;  %s890_s21 = sphi %s938_s21, %s1277_s21   ;;  %s886_s20 = sphi %s936_s20, %s1276_s20   ;;  %s882_s19 = sphi %s934_s19, %s1275_s19   ;;  %s878_s18 = sphi %s932_s18, %s1274_s18  }
   0x6   : > { %s957_s24 = sadd.s32 1, %s890_s21   ;;  %s28_s25 = sadd.s32 1, %s886_s20 }
   0x7   : > { %s25_s26 = ssub.s32 %s890_s21, %s957_s24  ;;  %p35_p0 = scmp.ne.s32.totalorder %s886_s20, %s882_s19 }
   0x8   : > { %p26_p1 = scmp.eq.s32.totalorder %s25_s26, 0  ;;  %p36_p2 = scmp.eq.s32.totalorder %s890_s21, 0 }
   0x9   : > { %p41_p3 = scmp.ne.s32.totalorder %s882_s19, %s878_s18  ;;  %p42_p4 = scmp.eq.s32.totalorder %s953_s22, 0 }
   0xa   : > { %s969_s27 = scalar_select %p26_p1, %s886_s20, %s28_s25  }
   0xb   : > { %p971_p5 = por %p36_p2, %p35_p0  ;;  %p975_p6 = por %p42_p4, %p41_p3 }
   0xc   : > { %p149_p7 = scmp.eq.s32.totalorder %s953_s22, 1  ;;  %p155_p8 = scmp.eq.s32.totalorder %s633_s23, 1 }
   0xd   : > { %s1266_s29 = scalar_select %p975_p6, 1, 0 }
   0xe   : > { %p752_p10 = scmp.lt.s32.totalorder %s890_s21, 2  ;;  %p982_p11 = por %p149_p7, %p35_p0 }
   0xf   : > { %p986_p12 = por %p155_p8, %p41_p3  ;;  %s187_s7 = sand.u32 1, %s886_s20  }
  0x10   : > { %s1267_s30 = scalar_select %p982_p11, 1, 0 }
  0x11   : > { %s1268_s6 = scalar_select %p986_p12, 1, 0 }
  0x12   : > { %s651_s8 = sshll.u32 %s890_s21, 11  ;;  %s636_s9 = sshll.u32 %s187_s7, 7 }
  0x13   : > { %s995_s12 = scalar_lea.hbm %s1257_s0, %s651_s8  ;;  %s191_s13 = scalar_lea.vmem [#allocation2], %s636_s9 }
  0x14   : > { %s198_s14 = sshll.u32 %s191_s13, 4  ;;  %p999_p13 = pnand %p752_p10, %p971_p5  ;;  %s1003_s14 = int_to_ptr.vmem [resolvable:$true] %s198_s14 }
  0x15   : > { %s1005_s16 = scalar_lea.sflag [#allocation3], %s187_s7  ;;  %s798_s17 = scalar_lea.hbm %s995_s12, 2048 }
  0x16   : > { %p799_p0 = scmp.ne.s32.totalorder %s995_s12, %s798_s17  ;;  %p800_p1 = pneg %p999_p13 }
  0x17   : > { %s803_s26 = scalar_lea.hbm %s1257_s0, 4096  ;;  %p804_p4 = scmp.lt.s32.totalorder %s995_s12, %s1257_s0 }
  0x18   : > { %p801_p2 = pnand %p800_p1, %p799_p0  ;;  %p805_p5 = scmp.lt.s32.totalorder %s803_s26, %s798_s17 }
  0x1a   : > { %p802_p3 = pneg %p801_p2  ;;  %p806_p7 = por %p805_p5, %p804_p4 }
  0x1c   : > { %p807_p8 = pnand %p806_p7, %p802_p3 }
  0x1e   : > { %810 = shalt.err (!%p807_p8)
}
  0x1f   : > { %s811_s7 = scalar_lea.vmem %s1003_s14, 2048  ;;  %s892_s9 = smov [#allocation2]  }
  0x20   : > { %p812_p10 = scmp.ne.s32.totalorder %s1003_s14, %s811_s7  ;;  %s816_s10 = sshll.u32 %s892_s9, 4  ;;  %s817_s10 = int_to_ptr.vmem [resolvable:$false] %s816_s10 }
  0x21   : > { %s818_s11 = scalar_lea.vmem %s817_s10, 4096  ;;  %p819_p2 = scmp.lt.s32.totalorder %s1003_s14, %s817_s10 }
  0x22   : > { %p814_p9 = pnand %p812_p10, %p800_p1  ;;  %p820_p12 = scmp.lt.s32.totalorder %s818_s11, %s811_s7 }
  0x24   : > { %p815_p0 = pneg %p814_p9  ;;  %p821_p11 = por %p820_p12, %p819_p2 }
  0x26   : > { %p822_p6 = pnand %p821_p11, %p815_p0 }
  0x28   : > { %825 = shalt.err (!%p822_p6)
}
  0x29   : > { %s893_s13 = smov 128   ;;  %s894_s17 = smov 8  }
  0x2a   : > { %747 = dma.hbm_to_vmem [thread:$0]  (!%p999_p13), %s995_s12, 2048, %s1003_s14, %s1005_s16, %s893_s13, %s893_s13, %s894_s17  }
  0x2b   : > { %p639_p9 = scmp.ge.s32.totalorder %s890_s21, 1  ;;  %p206_p1 = scmp.lt.s32.totalorder %s890_s21, 3 }
  0x2d   : > { %p207_p3 = pnand %p639_p9, %p206_p1 }
  0x2e   : > { %s1029_s23 = sand.u32 (!%p207_p3), 1, %s882_s19   ;;  %p1270_p6 = scmp.ne.s32.totalorder (!%p207_p3), %s1266_s29, 0 }
  0x2f   : > { %210 = sbr.rel (%p207_p3) target bundleno = 965 (0x3c5), region = 40  ;;  %s640_s25 = sshll.u32 (!%p207_p3), %s1029_s23, 7 }
  0x30   : > { %s213_s26 = scalar_lea.sflag (!%p207_p3), [#allocation3], %s1029_s23  ;;  %s1035_s28 = scalar_lea.vmem (!%p207_p3), [#allocation2], %s640_s25 }
  0x34   : > { %869 = dma.done.wait (%p1270_p6), %s213_s26, 2048  }
  0x35   : > { %871 = vsyncadd (%p1270_p6), %s213_s26, 4294965248  ;;  %v895_v0 = vmov 0.0   ;;  %vm896_vm0 = vmmov 0   ;;  %v1048_v1 = vld [vmem:[%s1035_s28 + $0x78] sm:$0xff]  ;;  %v1051_v2 = vld [vmem:[%s1035_s28 + $0x70] sm:$0xff]  ;;  %v897_v17 = vmov 1.0   ;;  %v510_v45 = vlaneseq }
  0x36   : > { %681 = vmatprep.subr.mxu0 %v895_v0  ;;  %713 = vmatprep.mubr.msk.f32.mxu0 %vm896_vm0, %v895_v0  ;;  %v1056_v3 = vld [vmem:[%s1035_s28 + $0x68] sm:$0xff]  ;;  %v1061_v4 = vld [vmem:[%s1035_s28 + $0x60] sm:$0xff]  ;;  %v1066_v5 = vld [vmem:[%s1035_s28 + $0x58] sm:$0xff]  ;;  %s898_s14 = smov 64   ;;  %vm344_vm1 = vcmask 523264   ;;  %vm425_vm2 = vcmask 1043456  }
  0x37   : > { %716 = vmatprep.subr.mxu1 %v895_v0  ;;  %732 = vmatprep.mubr.msk.f32.mxu1 %vm896_vm0, %v895_v0  ;;  %v1071_v6 = vld [vmem:[%s1035_s28 + $0x50] sm:$0xff]  ;;  %v1076_v7 = vld [vmem:[%s1035_s28 + $0x48] sm:$0xff]  ;;  %v1081_v8 = vld [vmem:[%s1035_s28 + $0x40] sm:$0xff]  ;;  %vm421_vm3 = vcmask 31744   ;;  %v511_v46 = vshrl.u32 %v510_v45, 7  ;;  %s652_s11 = sshll.u32 %s953_s22, 11 }
  0x38   : > { %682 = vmatpush3.msra.mxu0 %v1048_v1  ;;  %v1086_v9 = vld [vmem:[%s1035_s28 + $0x38] sm:$0xff]  ;;  %v1091_v10 = vld [vmem:[%s1035_s28 + $0x30] sm:$0xff]  ;;  %v1096_v11 = vld [vmem:[%s1035_s28 + $0x28] sm:$0xff]  ;;  %s1174_s13 = scalar_lea.vmem [#allocation5], %s640_s25  ;;  %s1196_s26 = scalar_lea.hbm %s1262_s5, %s652_s11 }
  0x39   : > { %683 = vmatprep.subr.mxu0 %v895_v0  ;;  %v1101_v12 = vld [vmem:[%s1035_s28 + $0x20] sm:$0xff]  ;;  %v1106_v13 = vld [vmem:[%s1035_s28 + $0x18] sm:$0xff]  ;;  %v1111_v14 = vld [vmem:[%s1035_s28 + $0x10] sm:$0xff]  ;;  %v512_v47 = vsub.s32 0, %v511_v46  ;;  %s560_s17 = sshll.u32 %s1174_s13, 4  ;;  %p1271_p12 = scmp.ne.s32.totalorder %s1267_s30, 0  ;;  %s1198_s17 = int_to_ptr.vmem [resolvable:$true] %s560_s17 }
  0x3a   : > { %684 = vmatpush3.msra.mxu0 %v1051_v2  ;;  %v1116_v15 = vld [vmem:[%s1035_s28 + $0x8] sm:$0xff]  ;;  %v1121_v16 = vld [vmem:[%s1035_s28] sm:$0xff]  ;;  %v342_v18 = vld [vmem:[%s1258_s1 + $0x38] sm:$0xff]  ;;  %s547_s28 = scalar_lea.sflag [#allocation4], %s1029_s23  ;;  %s826_s29 = scalar_lea.vmem %s1198_s17, 2048 }
  0x3b   : > { %685 = vmatprep.subr.mxu0 %v895_v0  ;;  %v341_v19 = vld [vmem:[%s1258_s1 + $0x30] sm:$0xff]  ;;  %717 = vmatpush3.msra.mxu1 %v342_v18  ;;  %v340_v20 = vld [vmem:[%s1258_s1 + $0x28] sm:$0xff]  ;;  %v339_v21 = vld [vmem:[%s1258_s1 + $0x20] sm:$0xff]  ;;  %p827_p11 = scmp.ne.s32.totalorder %s1198_s17, %s826_s29  ;;  %s899_s12 = smov [#allocation5]  }
  0x3c   : > { %686 = vmatpush3.msra.mxu0 %v1056_v3  ;;  %718 = vmatprep.subr.mxu1 %v895_v0  ;;  %v338_v22 = vld [vmem:[%s1258_s1 + $0x18] sm:$0xff]  ;;  %v337_v23 = vld [vmem:[%s1258_s1 + $0x10] sm:$0xff]  ;;  %v336_v24 = vld [vmem:[%s1258_s1 + $0x8] sm:$0xff] }
  0x3d   : > { %687 = vmatprep.subr.mxu0 %v895_v0  ;;  %719 = vmatpush3.msra.mxu1 %v341_v19  ;;  %v335_v25 = vld [vmem:[%s1258_s1] sm:$0xff]  ;;  %p828_p13 = pnand %p827_p11, %p1271_p12 }
  0x3e   : > { %688 = vmatpush3.msra.mxu0 %v1061_v4  ;;  %720 = vmatprep.subr.mxu1 %v895_v0  ;;  %v419_v31 = vld [vmem:[%s1260_s3] sm:$0xf] }
  0x3f   : > { %689 = vmatprep.subr.mxu0 %v895_v0  ;;  %721 = vmatpush3.msra.mxu1 %v340_v20  ;;  %v343_v32 = vld [vmem:[%s1259_s2] sm:$0x1]  ;;  %p829_p4 = pneg %p828_p13 }
  0x40   : > { %690 = vmatpush3.msra.mxu0 %v1066_v5  ;;  %722 = vmatprep.subr.mxu1 %v895_v0  ;;  %v420_v37 = vld [vmem:[%s1261_s4] sm:$0x1] }
  0x41   : > { %691 = vmatprep.subr.mxu0 %v895_v0  ;;  %723 = vmatpush3.msra.mxu1 %v339_v21 }
  0x42   : > { %692 = vmatpush3.msra.mxu0 %v1071_v6  ;;  %724 = vmatprep.subr.mxu1 %v895_v0 }
  0x43   : > { %693 = vmatprep.subr.mxu0 %v895_v0  ;;  %725 = vmatpush3.msra.mxu1 %v338_v22 }
  0x44   : > { %694 = vmatpush3.msra.mxu0 %v1076_v7  ;;  %726 = vmatprep.subr.mxu1 %v895_v0 }
  0x45   : > { %695 = vmatprep.subr.mxu0 %v895_v0  ;;  %727 = vmatpush3.msra.mxu1 %v337_v23 }
  0x46   : > { %696 = vmatpush3.msra.mxu0 %v1081_v8  ;;  %728 = vmatprep.subr.mxu1 %v895_v0 }
  0x47   : > { %697 = vmatprep.subr.mxu0 %v895_v0  ;;  %729 = vmatpush3.msra.mxu1 %v336_v24 }
  0x48   : > { %698 = vmatpush3.msra.mxu0 %v1086_v9  ;;  %730 = vmatprep.subr.mxu1 %v895_v0 }
  0x49   : > { %699 = vmatprep.subr.mxu0 %v895_v0  ;;  %731 = vmatpush3.msra.mxu1 %v335_v25 }
  0x4a   : > { %700 = vmatpush3.msra.mxu0 %v1091_v10  ;;  %735 = vmatprep.subr.mxu1 %v895_v0 }
  0x4b   : > { %701 = vmatprep.subr.mxu0 %v895_v0 }
  0x4c   : > { %702 = vmatpush3.msra.mxu0 %v1096_v11 }
  0x4d   : > { %703 = vmatprep.subr.mxu0 %v895_v0 }
  0x4e   : > { %704 = vmatpush3.msra.mxu0 %v1101_v12 }
  0x4f   : > { %705 = vmatprep.subr.mxu0 %v895_v0 }
  0x50   : > { %706 = vmatpush3.msra.mxu0 %v1106_v13 }
  0x51   : > { %707 = vmatprep.subr.mxu0 %v895_v0 }
  0x52   : > { %708 = vmatpush3.msra.mxu0 %v1111_v14 }
  0x53   : > { %709 = vmatprep.subr.mxu0 %v895_v0 }
  0x54   : > { %710 = vmatpush3.msra.mxu0 %v1116_v15 }
  0x55   : > { %711 = vmatprep.subr.mxu0 %v895_v0 }
  0x56   : > { %712 = vmatpush3.msra.mxu0 %v1121_v16 }
  0x57   : > { %714 = vmatmul.mubr.f32.vlgmr.msra.gmra.mxu0 %v897_v17 }
 0x117   : > { %v325_v26 = vpop.f32.mrf.mxu0 }
 0x118   : > { %330 = vrot.lane.b32.xlu0 %v325_v26, %s898_s14 }
 0x119   : > { %v715_v27 = vpop.f32.mrf.mxu0 }
 0x18a   : > { %v331_v28 = vpop.permute.xlu0 %330 }
 0x18b   : > { %v333_v29 = vadd.f32 %v331_v28, %v325_v26 }
 0x18d   : > { %v334_v30 = vmul.f32 0.00390625, %v333_v29 }
 0x18f   : > { %733 = vmatmul.mubr.msk.f32.vlgmr.msra.gmra.mxu1 %vm344_vm1, %v334_v30 }
 0x190   : > { %737 = vmatprep.mubr.msk.f32.mxu1 %vm896_vm0, %v895_v0  ;;  %736 = vmatpush3.msk.msra.mxu1 %vm425_vm2, %v419_v31 }
 0x24f   : > { %v414_v33 = vpop.f32.mrf.mxu1 }
 0x250   : > { %v415_v34 = vadd.f32 %v414_v33, %v343_v32 }
 0x251   : > { %v734_v35 = vpop.f32.mrf.mxu1 }
 0x252   : > { %v418_v36 = vmax.f32 %v415_v34, 0.0 }
 0x254   : > { %738 = vmatmul.mubr.msk.f32.vlgmr.msra.gmra.mxu1 %vm421_vm3, %v418_v36 }
 0x314   : > { %v495_v38 = vpop.f32.mrf.mxu1 }
 0x315   : > { %v496_v39 = vadd.f32 %v495_v38, %v420_v37 }
 0x316   : > { %v739_v40 = vpop.f32.mrf.mxu1 }
 0x317   : > { %v645_v41 = vmul.f32 -1.442695, %v496_v39 }
 0x319   : > { %794 = vpow2.f32 %v645_v41 }
 0x326   : > { %v795_v42 = vpop.eup %794 }
 0x327   : > { %v502_v43 = vadd.f32 1.0, %v795_v42 }
 0x329   : > { %796 = vrcp.f32 %v502_v43 }
 0x336   : > { %v797_v44 = vpop.eup %796 }
 0x337   : > { %506 = vrot.lane.b32.xlu0 %v797_v44, %s898_s14  ;;  %s830_s14 = sshll.u32 %s899_s12, 4  ;;  %s831_s14 = int_to_ptr.vmem [resolvable:$false] %s830_s14 }
 0x338   : > { %s832_s15 = scalar_lea.vmem %s831_s14, 4096  ;;  %p833_p5 = scmp.lt.s32.totalorder %s1198_s17, %s831_s14 }
 0x339   : > { %p834_p7 = scmp.lt.s32.totalorder %s832_s15, %s826_s29 }
 0x33b   : > { %p835_p8 = por %p834_p7, %p833_p5 }
 0x33d   : > { %p836_p10 = pnand %p835_p8, %p829_p4 }
 0x3a9   : > { %v507_v48 = vpop.permute.xlu0 %506 }
 0x3aa   : > { %v509_v49 = vsel %vm344_vm1, %v797_v44, %v507_v48 }
 0x3ab   : > { %v513_v50 = vrot.slane %v509_v49, %v512_v47 }
 0x3ad   : > { %v514_v51 = vmul.f32 %v513_v50, %v1121_v16  ;;  %v515_v52 = vmul.f32 %v513_v50, %v1116_v15  ;;  %v516_v53 = vmul.f32 %v513_v50, %v1111_v14  ;;  %v517_v54 = vmul.f32 %v513_v50, %v1106_v13 }
 0x3ae   : > { %v518_v55 = vmul.f32 %v513_v50, %v1101_v12  ;;  %v519_v56 = vmul.f32 %v513_v50, %v1096_v11  ;;  %v520_v57 = vmul.f32 %v513_v50, %v1091_v10  ;;  %v521_v58 = vmul.f32 %v513_v50, %v1086_v9 }
 0x3af   : > { %v522_v59 = vmul.f32 %v513_v50, %v1081_v8  ;;  %v523_v60 = vmul.f32 %v513_v50, %v1076_v7  ;;  %v524_v61 = vmul.f32 %v513_v50, %v1071_v6  ;;  %v525_v62 = vmul.f32 %v513_v50, %v1066_v5  ;;  %530 = vst [vmem:[%s1174_s13] sm:$0xff] %v514_v51 }
 0x3b0   : > { %531 = vst [vmem:[%s1174_s13 + $0x8] sm:$0xff] %v515_v52  ;;  %532 = vst [vmem:[%s1174_s13 + $0x10] sm:$0xff] %v516_v53  ;;  %v526_v63 = vmul.f32 %v513_v50, %v1061_v4  ;;  %v527_v0 = vmul.f32 %v513_v50, %v1056_v3  ;;  %v528_v5 = vmul.f32 %v513_v50, %v1051_v2 }
 0x3b1   : > { %533 = vst [vmem:[%s1174_s13 + $0x18] sm:$0xff] %v517_v54  ;;  %v529_v6 = vmul.f32 %v513_v50, %v1048_v1  ;;  %534 = vst [vmem:[%s1174_s13 + $0x20] sm:$0xff] %v518_v55 }
 0x3b2   : > { %535 = vst [vmem:[%s1174_s13 + $0x28] sm:$0xff] %v519_v56  ;;  %536 = vst [vmem:[%s1174_s13 + $0x30] sm:$0xff] %v520_v57 }
 0x3b3   : > { %537 = vst [vmem:[%s1174_s13 + $0x38] sm:$0xff] %v521_v58  ;;  %538 = vst [vmem:[%s1174_s13 + $0x40] sm:$0xff] %v522_v59 }
 0x3b4   : > { %539 = vst [vmem:[%s1174_s13 + $0x48] sm:$0xff] %v523_v60  ;;  %540 = vst [vmem:[%s1174_s13 + $0x50] sm:$0xff] %v524_v61 }
 0x3b5   : > { %541 = vst [vmem:[%s1174_s13 + $0x58] sm:$0xff] %v525_v62  ;;  %542 = vst [vmem:[%s1174_s13 + $0x60] sm:$0xff] %v526_v63 }
 0x3b6   : > { %543 = vst [vmem:[%s1174_s13 + $0x68] sm:$0xff] %v527_v0  ;;  %544 = vst [vmem:[%s1174_s13 + $0x70] sm:$0xff] %v528_v5 }
 0x3b7   : > { %545 = vst [vmem:[%s1174_s13 + $0x78] sm:$0xff] %v529_v6 }
 0x3b8   : > { %839 = shalt.err (!%p836_p10)
}
 0x3b9   : > { %s840_s16 = scalar_lea.hbm %s1196_s26, 2048  ;;  %s844_s9 = scalar_lea.hbm %s1262_s5, 4096 }
 0x3ba   : > { %p841_p0 = scmp.ne.s32.totalorder %s1196_s26, %s840_s16  ;;  %p845_p1 = scmp.lt.s32.totalorder %s1196_s26, %s1262_s5 }
 0x3bb   : > { %p846_p3 = scmp.lt.s32.totalorder %s844_s9, %s840_s16 }
 0x3bc   : > { %p842_p2 = pnand %p841_p0, %p1271_p12 }
 0x3bd   : > { %p847_p6 = por %p846_p3, %p845_p1 }
 0x3be   : > { %p843_p9 = pneg %p842_p2 }
 0x3c0   : > { %p848_p11 = pnand %p847_p6, %p843_p9 }
 0x3c2   : > { %851 = shalt.err (!%p848_p11)
}
 0x3c3   : > { %s900_s13 = smov 128   ;;  %s901_s22 = smov 8  }
 0x3c4   : > { %742 = dma.vmem_to_hbm [thread:$0]  (%p1271_p12), %s1198_s17, 2048, %s1196_s26, %s547_s28, %s900_s13, %s900_s13, %s901_s22  }
 0x3c5 PF: > { %s575_s25 = sand.u32 1, %s878_s18   ;;  %p1272_p13 = scmp.ne.s32.totalorder %s1268_s6, 0 }
 0x3c6   : > { %p1273_p4 = scmp.ge.s32.totalorder %s890_s21, 2  ;;  %s576_s29 = scalar_lea.sflag [#allocation4], %s575_s25 }
 0x3c8   : > { %p749_p5 = pnand %p1273_p4, %p1272_p13 }
 0x3ca   : > { %p750_p7 = pneg %p749_p5 }
 0x3cc   : > { %873 = dma.done.wait (%p750_p7), %s576_s29, 2048  }
 0x3cd   : > { %875 = vsyncadd (%p750_p7), %s576_s29, 4294965248  ;;  %p18_p8 = scmp.ge.s32.totalorder %s957_s24, 4   ;;  %s1274_s18 = smov %s882_s19 }
 0x3ce   : > { %s1275_s19 = smov %s886_s20  ;;  %s1276_s20 = smov %s969_s27 }
 0x3cf   : > { %s1277_s21 = smov %s957_s24  ;;  %20 = sbr.rel (!%p18_p8) target bundleno = 5 (0x5), region = 85 }
 0x3d4   :  { %581 = vsyncpa [#allocation3], 1 }
 0x3d5   :  { %583 = vsyncpa [#allocation3 + $0x1], 1 }
 0x3d6   :  { %584 = vsyncpa [#allocation4], 1 }
 0x3d7   :  { %586 = vsyncpa [#allocation4 + $0x1], 1 }

// kernel: tpu_custom_call.1
= control target key start
LH: loop header
LB: loop body
LE: loop exit
PB: predicated region body
PF: predicated region fallthrough
CT: control target
= control target key end

     0   :  { %10 = vsyncpa [#allocation3], 0  ;;  %s1257_s0 = inlined_call_operand.hbm [shape: f32[2,128,128], index: 0, kind: input, shape index: {}]   ;;  %s1258_s1 = inlined_call_operand.vmem [shape: f32[64,4], index: 1, kind: input, shape index: {}]   ;;  %s1259_s2 = inlined_call_operand.vmem [shape: f32[1,4], index: 2, kind: input, shape index: {}]   ;;  %s1260_s3 = inlined_call_operand.vmem [shape: f32[4,64], index: 3, kind: input, shape index: {}]   ;;  %s1261_s4 = inlined_call_operand.vmem [shape: f32[1,64], index: 4, kind: input, shape index: {}]   ;;  %s1262_s5 = inlined_call_operand.hbm [shape: f32[2,128,128], index: 5, kind: output, shape index: {}]  }
   0x1   :  { %12 = vsyncpa [#allocation3 + $0x1], 0 }
   0x2   :  { %13 = vsyncpa [#allocation4], 0 }
   0x3   :  { %15 = vsyncpa [#allocation4 + $0x1], 0  ;;  %s932_s18 = smov 0   ;;  %s934_s19 = smov 0  }
   0x4   :  { %s936_s20 = smov 0   ;;  %s938_s21 = smov 0  }
   0x5 LB: > { %s953_s22 = sadd.s32 4294967295, %s890_s21   ;;  %s633_s23 = sadd.s32 4294967294, %s890_s21   ;;  %s890_s21 = sphi %s938_s21, %s1277_s21   ;;  %s886_s20 = sphi %s936_s20, %s1276_s20   ;;  %s882_s19 = sphi %s934_s19, %s1275_s19   ;;  %s878_s18 = sphi %s932_s18, %s1274_s18  }
   0x6   : > { %s957_s24 = sadd.s32 1, %s890_s21   ;;  %s28_s25 = sadd.s32 1, %s886_s20 }
   0x7   : > { %s25_s26 = ssub.s32 %s890_s21, %s957_s24  ;;  %p35_p0 = scmp.ne.s32.totalorder %s886_s20, %s882_s19 }
   0x8   : > { %p26_p1 = scmp.eq.s32.totalorder %s25_s26, 0  ;;  %p36_p2 = scmp.eq.s32.totalorder %s890_s21, 0 }
   0x9   : > { %p41_p3 = scmp.ne.s32.totalorder %s882_s19, %s878_s18  ;;  %p42_p4 = scmp.eq.s32.totalorder %s953_s22, 0 }
   0xa   : > { %s969_s27 = scalar_select %p26_p1, %s886_s20, %s28_s25  }
   0xb   : > { %p971_p5 = por %p36_p2, %p35_p0  ;;  %p975_p6 = por %p42_p4, %p41_p3 }
   0xc   : > { %p149_p7 = scmp.eq.s32.totalorder %s953_s22, 1  ;;  %p155_p8 = scmp.eq.s32.totalorder %s633_s23, 1 }
   0xd   : > { %s1266_s29 = scalar_select %p975_p6, 1, 0 }
   0xe   : > { %p752_p10 = scmp.lt.s32.totalorder %s890_s21, 2  ;;  %p982_p11 = por %p149_p7, %p35_p0 }
   0xf   : > { %p986_p12 = por %p155_p8, %p41_p3  ;;  %s187_s7 = sand.u32 1, %s886_s20  }
  0x10   : > { %s1267_s30 = scalar_select %p982_p11, 1, 0 }
  0x11   : > { %s1268_s6 = scalar_select %p986_p12, 1, 0 }
  0x12   : > { %s651_s8 = sshll.u32 %s890_s21, 11  ;;  %s636_s9 = sshll.u32 %s187_s7, 7 }
  0x13   : > { %s995_s12 = scalar_lea.hbm %s1257_s0, %s651_s8  ;;  %s191_s13 = scalar_lea.vmem [#allocation2], %s636_s9 }
  0x14   : > { %s198_s14 = sshll.u32 %s191_s13, 4  ;;  %p999_p13 = pnand %p752_p10, %p971_p5  ;;  %s1003_s14 = int_to_ptr.vmem [resolvable:$true] %s198_s14 }
  0x15   : > { %s1005_s16 = scalar_lea.sflag [#allocation3], %s187_s7  ;;  %s798_s17 = scalar_lea.hbm %s995_s12, 2048 }
  0x16   : > { %p799_p0 = scmp.ne.s32.totalorder %s995_s12, %s798_s17  ;;  %p800_p1 = pneg %p999_p13 }
  0x17   : > { %s803_s26 = scalar_lea.hbm %s1257_s0, 4096  ;;  %p804_p4 = scmp.lt.s32.totalorder %s995_s12, %s1257_s0 }
  0x18   : > { %p801_p2 = pnand %p800_p1, %p799_p0  ;;  %p805_p5 = scmp.lt.s32.totalorder %s803_s26, %s798_s17 }
  0x1a   : > { %p802_p3 = pneg %p801_p2  ;;  %p806_p7 = por %p805_p5, %p804_p4 }
  0x1c   : > { %p807_p8 = pnand %p806_p7, %p802_p3 }
  0x1e   : > { %810 = shalt.err (!%p807_p8)
}
  0x1f   : > { %s811_s7 = scalar_lea.vmem %s1003_s14, 2048  ;;  %s892_s9 = smov [#allocation2]  }
  0x20   : > { %p812_p10 = scmp.ne.s32.totalorder %s1003_s14, %s811_s7  ;;  %s816_s10 = sshll.u32 %s892_s9, 4  ;;  %s817_s10 = int_to_ptr.vmem [resolvable:$false] %s816_s10 }
  0x21   : > { %s818_s11 = scalar_lea.vmem %s817_s10, 4096  ;;  %p819_p2 = scmp.lt.s32.totalorder %s1003_s14, %s817_s10 }
  0x22   : > { %p814_p9 = pnand %p812_p10, %p800_p1  ;;  %p820_p12 = scmp.lt.s32.totalorder %s818_s11, %s811_s7 }
  0x24   : > { %p815_p0 = pneg %p814_p9  ;;  %p821_p11 = por %p820_p12, %p819_p2 }
  0x26   : > { %p822_p6 = pnand %p821_p11, %p815_p0 }
  0x28   : > { %825 = shalt.err (!%p822_p6)
}
  0x29   : > { %s893_s13 = smov 128   ;;  %s894_s17 = smov 8  }
  0x2a   : > { %747 = dma.hbm_to_vmem [thread:$0]  (!%p999_p13), %s995_s12, 2048, %s1003_s14, %s1005_s16, %s893_s13, %s893_s13, %s894_s17  }
  0x2b   : > { %p639_p9 = scmp.ge.s32.totalorder %s890_s21, 1  ;;  %p206_p1 = scmp.lt.s32.totalorder %s890_s21, 3 }
  0x2d   : > { %p207_p3 = pnand %p639_p9, %p206_p1 }
  0x2e   : > { %s1029_s23 = sand.u32 (!%p207_p3), 1, %s882_s19   ;;  %p1270_p6 = scmp.ne.s32.totalorder (!%p207_p3), %s1266_s29, 0 }
  0x2f   : > { %210 = sbr.rel (%p207_p3) target bundleno = 965 (0x3c5), region = 40  ;;  %s640_s25 = sshll.u32 (!%p207_p3), %s1029_s23, 7 }
  0x30   : > { %s213_s26 = scalar_lea.sflag (!%p207_p3), [#allocation3], %s1029_s23  ;;  %s1035_s28 = scalar_lea.vmem (!%p207_p3), [#allocation2], %s640_s25 }
  0x34   : > { %869 = dma.done.wait (%p1270_p6), %s213_s26, 2048  }
  0x35   : > { %871 = vsyncadd (%p1270_p6), %s213_s26, 4294965248  ;;  %v895_v0 = vmov 0.0   ;;  %vm896_vm0 = vmmov 0   ;;  %v1048_v1 = vld [vmem:[%s1035_s28 + $0x78] sm:$0xff]  ;;  %v1051_v2 = vld [vmem:[%s1035_s28 + $0x70] sm:$0xff]  ;;  %v897_v17 = vmov 1.0   ;;  %v510_v45 = vlaneseq }
  0x36   : > { %681 = vmatprep.subr.mxu0 %v895_v0  ;;  %713 = vmatprep.mubr.msk.f32.mxu0 %vm896_vm0, %v895_v0  ;;  %v1056_v3 = vld [vmem:[%s1035_s28 + $0x68] sm:$0xff]  ;;  %v1061_v4 = vld [vmem:[%s1035_s28 + $0x60] sm:$0xff]  ;;  %v1066_v5 = vld [vmem:[%s1035_s28 + $0x58] sm:$0xff]  ;;  %s898_s14 = smov 64   ;;  %vm344_vm1 = vcmask 523264   ;;  %vm425_vm2 = vcmask 1043456  }
  0x37   : > { %716 = vmatprep.subr.mxu1 %v895_v0  ;;  %732 = vmatprep.mubr.msk.f32.mxu1 %vm896_vm0, %v895_v0  ;;  %v1071_v6 = vld [vmem:[%s1035_s28 + $0x50] sm:$0xff]  ;;  %v1076_v7 = vld [vmem:[%s1035_s28 + $0x48] sm:$0xff]  ;;  %v1081_v8 = vld [vmem:[%s1035_s28 + $0x40] sm:$0xff]  ;;  %vm421_vm3 = vcmask 31744   ;;  %v511_v46 = vshrl.u32 %v510_v45, 7  ;;  %s652_s11 = sshll.u32 %s953_s22, 11 }
  0x38   : > { %682 = vmatpush3.msra.mxu0 %v1048_v1  ;;  %v1086_v9 = vld [vmem:[%s1035_s28 + $0x38] sm:$0xff]  ;;  %v1091_v10 = vld [vmem:[%s1035_s28 + $0x30] sm:$0xff]  ;;  %v1096_v11 = vld [vmem:[%s1035_s28 + $0x28] sm:$0xff]  ;;  %s1174_s13 = scalar_lea.vmem [#allocation5], %s640_s25  ;;  %s1196_s26 = scalar_lea.hbm %s1262_s5, %s652_s11 }
  0x39   : > { %683 = vmatprep.subr.mxu0 %v895_v0  ;;  %v1101_v12 = vld [vmem:[%s1035_s28 + $0x20] sm:$0xff]  ;;  %v1106_v13 = vld [vmem:[%s1035_s28 + $0x18] sm:$0xff]  ;;  %v1111_v14 = vld [vmem:[%s1035_s28 + $0x10] sm:$0xff]  ;;  %v512_v47 = vsub.s32 0, %v511_v46  ;;  %s560_s17 = sshll.u32 %s1174_s13, 4  ;;  %p1271_p12 = scmp.ne.s32.totalorder %s1267_s30, 0  ;;  %s1198_s17 = int_to_ptr.vmem [resolvable:$true] %s560_s17 }
  0x3a   : > { %684 = vmatpush3.msra.mxu0 %v1051_v2  ;;  %v1116_v15 = vld [vmem:[%s1035_s28 + $0x8] sm:$0xff]  ;;  %v1121_v16 = vld [vmem:[%s1035_s28] sm:$0xff]  ;;  %v342_v18 = vld [vmem:[%s1258_s1 + $0x38] sm:$0xff]  ;;  %s547_s28 = scalar_lea.sflag [#allocation4], %s1029_s23  ;;  %s826_s29 = scalar_lea.vmem %s1198_s17, 2048 }
  0x3b   : > { %685 = vmatprep.subr.mxu0 %v895_v0  ;;  %v341_v19 = vld [vmem:[%s1258_s1 + $0x30] sm:$0xff]  ;;  %717 = vmatpush3.msra.mxu1 %v342_v18  ;;  %v340_v20 = vld [vmem:[%s1258_s1 + $0x28] sm:$0xff]  ;;  %v339_v21 = vld [vmem:[%s1258_s1 + $0x20] sm:$0xff]  ;;  %p827_p11 = scmp.ne.s32.totalorder %s1198_s17, %s826_s29  ;;  %s899_s12 = smov [#allocation5]  }
  0x3c   : > { %686 = vmatpush3.msra.mxu0 %v1056_v3  ;;  %718 = vmatprep.subr.mxu1 %v895_v0  ;;  %v338_v22 = vld [vmem:[%s1258_s1 + $0x18] sm:$0xff]  ;;  %v337_v23 = vld [vmem:[%s1258_s1 + $0x10] sm:$0xff]  ;;  %v336_v24 = vld [vmem:[%s1258_s1 + $0x8] sm:$0xff] }
  0x3d   : > { %687 = vmatprep.subr.mxu0 %v895_v0  ;;  %719 = vmatpush3.msra.mxu1 %v341_v19  ;;  %v335_v25 = vld [vmem:[%s1258_s1] sm:$0xff]  ;;  %p828_p13 = pnand %p827_p11, %p1271_p12 }
  0x3e   : > { %688 = vmatpush3.msra.mxu0 %v1061_v4  ;;  %720 = vmatprep.subr.mxu1 %v895_v0  ;;  %v419_v31 = vld [vmem:[%s1260_s3] sm:$0xf] }
  0x3f   : > { %689 = vmatprep.subr.mxu0 %v895_v0  ;;  %721 = vmatpush3.msra.mxu1 %v340_v20  ;;  %v343_v32 = vld [vmem:[%s1259_s2] sm:$0x1]  ;;  %p829_p4 = pneg %p828_p13 }
  0x40   : > { %690 = vmatpush3.msra.mxu0 %v1066_v5  ;;  %722 = vmatprep.subr.mxu1 %v895_v0  ;;  %v420_v37 = vld [vmem:[%s1261_s4] sm:$0x1] }
  0x41   : > { %691 = vmatprep.subr.mxu0 %v895_v0  ;;  %723 = vmatpush3.msra.mxu1 %v339_v21 }
  0x42   : > { %692 = vmatpush3.msra.mxu0 %v1071_v6  ;;  %724 = vmatprep.subr.mxu1 %v895_v0 }
  0x43   : > { %693 = vmatprep.subr.mxu0 %v895_v0  ;;  %725 = vmatpush3.msra.mxu1 %v338_v22 }
  0x44   : > { %694 = vmatpush3.msra.mxu0 %v1076_v7  ;;  %726 = vmatprep.subr.mxu1 %v895_v0 }
  0x45   : > { %695 = vmatprep.subr.mxu0 %v895_v0  ;;  %727 = vmatpush3.msra.mxu1 %v337_v23 }
  0x46   : > { %696 = vmatpush3.msra.mxu0 %v1081_v8  ;;  %728 = vmatprep.subr.mxu1 %v895_v0 }
  0x47   : > { %697 = vmatprep.subr.mxu0 %v895_v0  ;;  %729 = vmatpush3.msra.mxu1 %v336_v24 }
  0x48   : > { %698 = vmatpush3.msra.mxu0 %v1086_v9  ;;  %730 = vmatprep.subr.mxu1 %v895_v0 }
  0x49   : > { %699 = vmatprep.subr.mxu0 %v895_v0  ;;  %731 = vmatpush3.msra.mxu1 %v335_v25 }
  0x4a   : > { %700 = vmatpush3.msra.mxu0 %v1091_v10  ;;  %735 = vmatprep.subr.mxu1 %v895_v0 }
  0x4b   : > { %701 = vmatprep.subr.mxu0 %v895_v0 }
  0x4c   : > { %702 = vmatpush3.msra.mxu0 %v1096_v11 }
  0x4d   : > { %703 = vmatprep.subr.mxu0 %v895_v0 }
  0x4e   : > { %704 = vmatpush3.msra.mxu0 %v1101_v12 }
  0x4f   : > { %705 = vmatprep.subr.mxu0 %v895_v0 }
  0x50   : > { %706 = vmatpush3.msra.mxu0 %v1106_v13 }
  0x51   : > { %707 = vmatprep.subr.mxu0 %v895_v0 }
  0x52   : > { %708 = vmatpush3.msra.mxu0 %v1111_v14 }
  0x53   : > { %709 = vmatprep.subr.mxu0 %v895_v0 }
  0x54   : > { %710 = vmatpush3.msra.mxu0 %v1116_v15 }
  0x55   : > { %711 = vmatprep.subr.mxu0 %v895_v0 }
  0x56   : > { %712 = vmatpush3.msra.mxu0 %v1121_v16 }
  0x57   : > { %714 = vmatmul.mubr.f32.vlgmr.msra.gmra.mxu0 %v897_v17 }
 0x117   : > { %v325_v26 = vpop.f32.mrf.mxu0 }
 0x118   : > { %330 = vrot.lane.b32.xlu0 %v325_v26, %s898_s14 }
 0x119   : > { %v715_v27 = vpop.f32.mrf.mxu0 }
 0x18a   : > { %v331_v28 = vpop.permute.xlu0 %330 }
 0x18b   : > { %v333_v29 = vadd.f32 %v331_v28, %v325_v26 }
 0x18d   : > { %v334_v30 = vmul.f32 0.00390625, %v333_v29 }
 0x18f   : > { %733 = vmatmul.mubr.msk.f32.vlgmr.msra.gmra.mxu1 %vm344_vm1, %v334_v30 }
 0x190   : > { %737 = vmatprep.mubr.msk.f32.mxu1 %vm896_vm0, %v895_v0  ;;  %736 = vmatpush3.msk.msra.mxu1 %vm425_vm2, %v419_v31 }
 0x24f   : > { %v414_v33 = vpop.f32.mrf.mxu1 }
 0x250   : > { %v415_v34 = vadd.f32 %v414_v33, %v343_v32 }
 0x251   : > { %v734_v35 = vpop.f32.mrf.mxu1 }
 0x252   : > { %v418_v36 = vmax.f32 %v415_v34, 0.0 }
 0x254   : > { %738 = vmatmul.mubr.msk.f32.vlgmr.msra.gmra.mxu1 %vm421_vm3, %v418_v36 }
 0x314   : > { %v495_v38 = vpop.f32.mrf.mxu1 }
 0x315   : > { %v496_v39 = vadd.f32 %v495_v38, %v420_v37 }
 0x316   : > { %v739_v40 = vpop.f32.mrf.mxu1 }
 0x317   : > { %v645_v41 = vmul.f32 -1.442695, %v496_v39 }
 0x319   : > { %794 = vpow2.f32 %v645_v41 }
 0x326   : > { %v795_v42 = vpop.eup %794 }
 0x327   : > { %v502_v43 = vadd.f32 1.0, %v795_v42 }
 0x329   : > { %796 = vrcp.f32 %v502_v43 }
 0x336   : > { %v797_v44 = vpop.eup %796 }
 0x337   : > { %506 = vrot.lane.b32.xlu0 %v797_v44, %s898_s14  ;;  %s830_s14 = sshll.u32 %s899_s12, 4  ;;  %s831_s14 = int_to_ptr.vmem [resolvable:$false] %s830_s14 }
 0x338   : > { %s832_s15 = scalar_lea.vmem %s831_s14, 4096  ;;  %p833_p5 = scmp.lt.s32.totalorder %s1198_s17, %s831_s14 }
 0x339   : > { %p834_p7 = scmp.lt.s32.totalorder %s832_s15, %s826_s29 }
 0x33b   : > { %p835_p8 = por %p834_p7, %p833_p5 }
 0x33d   : > { %p836_p10 = pnand %p835_p8, %p829_p4 }
 0x3a9   : > { %v507_v48 = vpop.permute.xlu0 %506 }
 0x3aa   : > { %v509_v49 = vsel %vm344_vm1, %v797_v44, %v507_v48 }
 0x3ab   : > { %v513_v50 = vrot.slane %v509_v49, %v512_v47 }
 0x3ad   : > { %v514_v51 = vmul.f32 %v513_v50, %v1121_v16  ;;  %v515_v52 = vmul.f32 %v513_v50, %v1116_v15  ;;  %v516_v53 = vmul.f32 %v513_v50, %v1111_v14  ;;  %v517_v54 = vmul.f32 %v513_v50, %v1106_v13 }
 0x3ae   : > { %v518_v55 = vmul.f32 %v513_v50, %v1101_v12  ;;  %v519_v56 = vmul.f32 %v513_v50, %v1096_v11  ;;  %v520_v57 = vmul.f32 %v513_v50, %v1091_v10  ;;  %v521_v58 = vmul.f32 %v513_v50, %v1086_v9 }
 0x3af   : > { %v522_v59 = vmul.f32 %v513_v50, %v1081_v8  ;;  %v523_v60 = vmul.f32 %v513_v50, %v1076_v7  ;;  %v524_v61 = vmul.f32 %v513_v50, %v1071_v6  ;;  %v525_v62 = vmul.f32 %v513_v50, %v1066_v5  ;;  %530 = vst [vmem:[%s1174_s13] sm:$0xff] %v514_v51 }
 0x3b0   : > { %531 = vst [vmem:[%s1174_s13 + $0x8] sm:$0xff] %v515_v52  ;;  %532 = vst [vmem:[%s1174_s13 + $0x10] sm:$0xff] %v516_v53  ;;  %v526_v63 = vmul.f32 %v513_v50, %v1061_v4  ;;  %v527_v0 = vmul.f32 %v513_v50, %v1056_v3  ;;  %v528_v5 = vmul.f32 %v513_v50, %v1051_v2 }
 0x3b1   : > { %533 = vst [vmem:[%s1174_s13 + $0x18] sm:$0xff] %v517_v54  ;;  %v529_v6 = vmul.f32 %v513_v50, %v1048_v1  ;;  %534 = vst [vmem:[%s1174_s13 + $0x20] sm:$0xff] %v518_v55 }
 0x3b2   : > { %535 = vst [vmem:[%s1174_s13 + $0x28] sm:$0xff] %v519_v56  ;;  %536 = vst [vmem:[%s1174_s13 + $0x30] sm:$0xff] %v520_v57 }
 0x3b3   : > { %537 = vst [vmem:[%s1174_s13 + $0x38] sm:$0xff] %v521_v58  ;;  %538 = vst [vmem:[%s1174_s13 + $0x40] sm:$0xff] %v522_v59 }
 0x3b4   : > { %539 = vst [vmem:[%s1174_s13 + $0x48] sm:$0xff] %v523_v60  ;;  %540 = vst [vmem:[%s1174_s13 + $0x50] sm:$0xff] %v524_v61 }
 0x3b5   : > { %541 = vst [vmem:[%s1174_s13 + $0x58] sm:$0xff] %v525_v62  ;;  %542 = vst [vmem:[%s1174_s13 + $0x60] sm:$0xff] %v526_v63 }
 0x3b6   : > { %543 = vst [vmem:[%s1174_s13 + $0x68] sm:$0xff] %v527_v0  ;;  %544 = vst [vmem:[%s1174_s13 + $0x70] sm:$0xff] %v528_v5 }
 0x3b7   : > { %545 = vst [vmem:[%s1174_s13 + $0x78] sm:$0xff] %v529_v6 }
 0x3b8   : > { %839 = shalt.err (!%p836_p10)
}
 0x3b9   : > { %s840_s16 = scalar_lea.hbm %s1196_s26, 2048  ;;  %s844_s9 = scalar_lea.hbm %s1262_s5, 4096 }
 0x3ba   : > { %p841_p0 = scmp.ne.s32.totalorder %s1196_s26, %s840_s16  ;;  %p845_p1 = scmp.lt.s32.totalorder %s1196_s26, %s1262_s5 }
 0x3bb   : > { %p846_p3 = scmp.lt.s32.totalorder %s844_s9, %s840_s16 }
 0x3bc   : > { %p842_p2 = pnand %p841_p0, %p1271_p12 }
 0x3bd   : > { %p847_p6 = por %p846_p3, %p845_p1 }
 0x3be   : > { %p843_p9 = pneg %p842_p2 }
 0x3c0   : > { %p848_p11 = pnand %p847_p6, %p843_p9 }
 0x3c2   : > { %851 = shalt.err (!%p848_p11)
}
 0x3c3   : > { %s900_s13 = smov 128   ;;  %s901_s22 = smov 8  }
 0x3c4   : > { %742 = dma.vmem_to_hbm [thread:$0]  (%p1271_p12), %s1198_s17, 2048, %s1196_s26, %s547_s28, %s900_s13, %s900_s13, %s901_s22  }
 0x3c5 PF: > { %s575_s25 = sand.u32 1, %s878_s18   ;;  %p1272_p13 = scmp.ne.s32.totalorder %s1268_s6, 0 }
 0x3c6   : > { %p1273_p4 = scmp.ge.s32.totalorder %s890_s21, 2  ;;  %s576_s29 = scalar_lea.sflag [#allocation4], %s575_s25 }
 0x3c8   : > { %p749_p5 = pnand %p1273_p4, %p1272_p13 }
 0x3ca   : > { %p750_p7 = pneg %p749_p5 }
 0x3cc   : > { %873 = dma.done.wait (%p750_p7), %s576_s29, 2048  }
 0x3cd   : > { %875 = vsyncadd (%p750_p7), %s576_s29, 4294965248  ;;  %p18_p8 = scmp.ge.s32.totalorder %s957_s24, 4   ;;  %s1274_s18 = smov %s882_s19 }
 0x3ce   : > { %s1275_s19 = smov %s886_s20  ;;  %s1276_s20 = smov %s969_s27 }
 0x3cf   : > { %s1277_s21 = smov %s957_s24  ;;  %20 = sbr.rel (!%p18_p8) target bundleno = 5 (0x5), region = 85 }
 0x3d4   :  { %581 = vsyncpa [#allocation3], 1 }
 0x3d5   :  { %583 = vsyncpa [#allocation3 + $0x1], 1 }
 0x3d6   :  { %584 = vsyncpa [#allocation4], 1 }
 0x3d7   :  { %586 = vsyncpa [#allocation4 + $0x1], 1 }

</bundles_post_ra>
